<compile_context>
chip_gen: v6e
topology: v6e:2x2x1
jax: 0.10.0
libtpu: 0.0.40
codegen_flags: <defaults>
</compile_context>

<pallas_src>
import jax
import jax.numpy as jnp
from jax.experimental import pallas as pl
from jax.experimental.pallas import tpu as pltpu

EPS = 1e-5
SLOPE = 0.2
LANE = 128
VMEM_LIMIT = 32 * 1024 * 1024  # conservative scoped-VMEM budget; safe on v5e/v6e/v7x


def _round_up(x, m):
    return (x + m - 1) // m * m


# ---------- pass 1: conv-as-matmul (bf16 MXU, f32 acc) + per-tile channel statistics ---------- #
def conv_stats_kernel(p_ref, w_ref, y_ref, sum_ref, ssq_ref):
    """p_ref (TM,K) bf16, w_ref (K,Cp) bf16 -> y_ref (TM,Cp) bf16 (raw conv output),
    sum_ref/ssq_ref (1,8,Cp) f32 per-tile partial statistics (all 8 sublanes carry the same
    value so the store stays (8,128)-tile aligned; the glue reads row 0 and tree-reduces)."""
    y32 = jnp.dot(p_ref[...], w_ref[...], preferred_element_type=jnp.float32)
    y_ref[...] = y32.astype(y_ref.dtype)
    s = jnp.sum(y32, axis=0, keepdims=True)        # (1, Cp)
    q = jnp.sum(y32 * y32, axis=0, keepdims=True)  # (1, Cp)
    sum_ref[...] = jnp.broadcast_to(s[None, :, :], sum_ref.shape)
    ssq_ref[...] = jnp.broadcast_to(q[None, :, :], ssq_ref.shape)


# ---------- pass 2 (final stage only): folded BatchNorm FMA + LeakyReLU(0.2) ---------- #
def bn_lrelu_kernel(y_ref, s_ref, t_ref, o_ref):
    z = y_ref[...].astype(jnp.float32) * s_ref[...] + t_ref[...]
    o_ref[...] = jnp.where(z >= 0, z, SLOPE * z).astype(o_ref.dtype)


def _im2col(xp_nhwc, stride):
    """Reflection-padded NHWC (N,Hp,Wp,C) -> (N*Ho*Wo, 9*C) bf16; tap order (kh, kw, c)."""
    N, Hp, Wp, C = xp_nhwc.shape
    Ho = (Hp - 3) // stride + 1
    Wo = (Wp - 3) // stride + 1
    taps = []
    for kh in range(3):
        for kw in range(3):
            taps.append(
                jax.lax.slice(
                    xp_nhwc,
                    (0, kh, kw, 0),
                    (N, kh + stride * (Ho - 1) + 1, kw + stride * (Wo - 1) + 1, C),
                    (1, stride, stride, 1),
                )
            )
    patches = jnp.concatenate(taps, axis=-1)  # (N, Ho, Wo, 9*C)
    return patches.reshape(N * Ho * Wo, 9 * C), (N, Ho, Wo)


def conv_stats_pass(x_nhwc, w_oihw, stride):
    """reflect-pad -> conv3x3(stride) as a tiled MXU matmul with fused batch statistics.

    Returns (y bf16 (Mp,Cp) raw conv output, per-channel sums, per-channel sum-of-squares,
    meta).  The conv bias is omitted: it is cancelled by the training-mode BN mean subtraction.
    """
    cout = w_oihw.shape[0]
    xp = jnp.pad(
        x_nhwc.astype(jnp.bfloat16), ((0, 0), (1, 1), (1, 1), (0, 0)), mode="reflect"
    )
    patches, (N, Ho, Wo) = _im2col(xp, stride)  # (M, K) bf16, K = 9*Cin, NOT lane-padded
    M, K = patches.shape

    # PyTorch OIHW -> (kh, kw, cin, cout) flattened to (9*cin, cout), matching the tap order.
    w2d = jnp.transpose(w_oihw, (2, 3, 1, 0)).reshape(K, cout).astype(jnp.bfloat16)

    # Lane-dense output channels; K stays un-padded (legal full-dim block).
    # For realistic channel counts Cp naturally becomes a multiple of 256, filling the
    # v6e/v7x 256-wide MXU tiles; 128 alignment is already ideal on v5e.
    Cp = _round_up(cout, LANE)
    TM = min(1024, _round_up(M, 16))  # multiple of 16 for bf16 sublane packing
    Mp = _round_up(M, TM)
    num_tiles = Mp // TM

    if Mp != M:
        patches = jnp.pad(patches, ((0, Mp - M), (0, 0)))
    if Cp != cout:
        w2d = jnp.pad(w2d, ((0, 0), (0, Cp - cout)))

    y, psum, pssq = pl.pallas_call(
        conv_stats_kernel,
        grid=(num_tiles,),
        in_specs=[
            pl.BlockSpec((TM, K), lambda m: (m, 0)),   # K = full array dim (no padding)
            pl.BlockSpec((K, Cp), lambda m: (0, 0)),   # weights resident across the grid
        ],
        out_specs=[
            pl.BlockSpec((TM, Cp), lambda m: (m, 0)),
            pl.BlockSpec((1, 8, Cp), lambda m: (m, 0, 0)),
            pl.BlockSpec((1, 8, Cp), lambda m: (m, 0, 0)),
        ],
        out_shape=[
            jax.ShapeDtypeStruct((Mp, Cp), jnp.bfloat16),            # bf16 y writeback
            jax.ShapeDtypeStruct((num_tiles, 8, Cp), jnp.float32),   # per-tile partial sums
            jax.ShapeDtypeStruct((num_tiles, 8, Cp), jnp.float32),   # per-tile partial sumsq
        ],
        compiler_params=pltpu.CompilerParams(
            # No resident accumulator -> every output block is per-tile -> fully parallel
            # (megacore-shardable on v7x).
            dimension_semantics=("parallel",),
            vmem_limit_bytes=VMEM_LIMIT,
        ),
    )(patches, w2d)

    # Tree-reduce the per-tile partials (more robust than one long sequential f32 accumulation).
    sums = jnp.sum(psum[:, 0, :], axis=0)
    ssqs = jnp.sum(pssq[:, 0, :], axis=0)
    meta = dict(N=N, Ho=Ho, Wo=Wo, M=M, Mp=Mp, cout=cout, Cp=Cp, TM=TM, num_tiles=num_tiles)
    return y, sums, ssqs, meta


def _fold_bn(sums, ssqs, gamma, beta, meta):
    """Fold training-mode BatchNorm (batch stats, biased variance, eps=1e-5) into one
    scale/shift: z = y*s + t.  Zero-padded rows/channels contribute nothing; divide by real M."""
    M, cout, Cp = meta["M"], meta["cout"], meta["Cp"]
    mean = sums / M
    var = jnp.maximum(ssqs / M - mean * mean, 0.0)
    g = jnp.pad(gamma.astype(jnp.float32), (0, Cp - cout))
    b = jnp.pad(beta.astype(jnp.float32), (0, Cp - cout))
    s = g * jax.lax.rsqrt(var + EPS)
    t = b - s * mean
    return s.reshape(1, Cp), t.reshape(1, Cp)


def _bn_lrelu_pallas(y, s, t, meta):
    """Final-stage pass 2: scale/shift + LeakyReLU, fully parallel over row tiles."""
    Mp, Cp, TM, num_tiles = meta["Mp"], meta["Cp"], meta["TM"], meta["num_tiles"]
    return pl.pallas_call(
        bn_lrelu_kernel,
        grid=(num_tiles,),
        in_specs=[
            pl.BlockSpec((TM, Cp), lambda m: (m, 0)),
            pl.BlockSpec((1, Cp), lambda m: (0, 0)),
            pl.BlockSpec((1, Cp), lambda m: (0, 0)),
        ],
        out_specs=pl.BlockSpec((TM, Cp), lambda m: (m, 0)),
        out_shape=jax.ShapeDtypeStruct((Mp, Cp), jnp.float32),
        compiler_params=pltpu.CompilerParams(
            dimension_semantics=("parallel",),
            vmem_limit_bytes=VMEM_LIMIT,
        ),
    )(y, s, t)


def init_down_params(key, in_channels, out_channels):
    ks = jax.random.split(key, 8)
    scale1 = 1.0 / jnp.sqrt(in_channels * 9.0)
    scale2 = 1.0 / jnp.sqrt(out_channels * 9.0)
    return {
        "w1": jax.random.normal(ks[0], (out_channels, in_channels, 3, 3), jnp.float32) * scale1,
        # b1/b2 kept for parity with the PyTorch state dict; a bias before training-mode
        # BatchNorm is cancelled by the mean subtraction -> unused in the compute path.
        "b1": jax.random.normal(ks[1], (out_channels,), jnp.float32) * scale1,
        "g1": 1.0 + 0.1 * jax.random.normal(ks[2], (out_channels,), jnp.float32),
        "beta1": 0.1 * jax.random.normal(ks[3], (out_channels,), jnp.float32),
        "w2": jax.random.normal(ks[4], (out_channels, out_channels, 3, 3), jnp.float32) * scale2,
        "b2": jax.random.normal(ks[5], (out_channels,), jnp.float32) * scale2,
        "g2": 1.0 + 0.1 * jax.random.normal(ks[6], (out_channels,), jnp.float32),
        "beta2": 0.1 * jax.random.normal(ks[7], (out_channels,), jnp.float32),
    }


def down_forward(x_nchw, params):
    # Layout: NCHW in/out (PyTorch convention); NHWC / im2col internally.
    x = jnp.transpose(x_nchw, (0, 2, 3, 1))

    # ---- stage 1: reflect-pad -> conv3x3 stride 2 -> BN -> LeakyReLU ----
    y1, sum1, ssq1, m1 = conv_stats_pass(x, params["w1"], stride=2)
    s1, t1 = _fold_bn(sum1, ssq1, params["g1"], params["beta1"], m1)

    # Fold stage-1 BN + LeakyReLU into the stage-2 consumer: pure elementwise math that XLA
    # fuses into the stage-2 im2col producer -> no separate pass-2 HBM round trip here.
    a1 = y1[: m1["M"], : m1["cout"]].astype(jnp.float32)
    a1 = a1 * s1[:, : m1["cout"]] + t1[:, : m1["cout"]]
    a1 = jnp.where(a1 >= 0, a1, SLOPE * a1)
    a1 = a1.reshape(m1["N"], m1["Ho"], m1["Wo"], m1["cout"])

    # ---- stage 2: reflect-pad -> conv3x3 stride 1 -> BN -> LeakyReLU ----
    y2, sum2, ssq2, m2 = conv_stats_pass(a1, params["w2"], stride=1)
    s2, t2 = _fold_bn(sum2, ssq2, params["g2"], params["beta2"], m2)
    out = _bn_lrelu_pallas(y2, s2, t2, m2)

    # De-pad only when needed (skipped entirely when M and cout are already tile-aligned).
    if m2["Mp"] != m2["M"] or m2["Cp"] != m2["cout"]:
        out = out[: m2["M"], : m2["cout"]]
    out = out.reshape(m2["N"], m2["Ho"], m2["Wo"], m2["cout"])
    return jnp.transpose(out, (0, 3, 1, 2))


if __name__ == "__main__":
    key = jax.random.PRNGKey(0)
    k_x, k_p = jax.random.split(key)

    N, Cin, Cout, H, W = 2, 4, 8, 16, 16
    x = jax.random.normal(k_x, (N, Cin, H, W), jnp.float32)
    params = init_down_params(k_p, Cin, Cout)

    out = jax.jit(down_forward)(x, params)
    out = jax.block_until_ready(out)

    # stride-2 conv with pad 1, k=3 halves spatial dims; second conv preserves them.
    assert out.shape == (N, Cout, H // 2, W // 2), out.shape
    assert jnp.all(jnp.isfinite(out))
    print("KERNEL_OK")
</pallas_src>

<mosaic_0001>
module attributes {stable_mosaic.version = 11 : i64} {
  func.func @conv_stats_kernel(%arg0: i32, %arg1: memref<128x36xbf16, #tpu.memory_space<vmem>>, %arg2: memref<36x128xbf16, #tpu.memory_space<vmem>>, %arg3: memref<128x128xbf16, #tpu.memory_space<vmem>>, %arg4: memref<1x8x128xf32, #tpu.memory_space<vmem>>, %arg5: memref<1x8x128xf32, #tpu.memory_space<vmem>>) attributes {dimension_semantics = [#tpu.dimension_semantics<parallel>], iteration_bounds = array<i64: 1>, scalar_prefetch = 0 : i64, scratch_operands = 0 : i64, tpu.core_type = #tpu.core_type<tc>, window_params = [{transform_indices = @transform_0, window_bounds = array<i64: 128, 36>}, {pipeline_mode = #tpu.pipeline_mode<synchronous>, transform_indices = @transform_1, window_bounds = array<i64: 36, 128>}, {transform_indices = @transform_2, window_bounds = array<i64: 128, 128>}, {transform_indices = @transform_3, window_bounds = array<i64: 1, 8, 128>}, {transform_indices = @transform_4, window_bounds = array<i64: 1, 8, 128>}]} {
    %c0 = arith.constant 0 : index
    %c0_0 = arith.constant 0 : index
    %0 = vector.load %arg1[%c0, %c0_0] : memref<128x36xbf16, #tpu.memory_space<vmem>>, vector<128x36xbf16>
    %c0_1 = arith.constant 0 : index
    %c0_2 = arith.constant 0 : index
    %1 = vector.load %arg2[%c0_1, %c0_2] : memref<36x128xbf16, #tpu.memory_space<vmem>>, vector<36x128xbf16>
    %cst = arith.constant dense<0.000000e+00> : vector<128x128xf32>
    %2 = tpu.matmul %0, %1, %cst {dimension_numbers = #tpu.dot_dimension_numbers<[1], [0], [0], [1], [0, 0, 1, 1], [], []>} : vector<128x36xbf16>, vector<36x128xbf16>, vector<128x128xf32> -> vector<128x128xf32>
    %3 = arith.truncf %2 : vector<128x128xf32> to vector<128x128xbf16>
    %c0_3 = arith.constant 0 : index
    %c0_4 = arith.constant 0 : index
    %4 = vector.load %arg3[%c0_3, %c0_4] : memref<128x128xbf16, #tpu.memory_space<vmem>>, vector<128x128xbf16>
    tpu.vector_store %arg3[%c0_3, %c0_4], %3 {strides = array<i32>} : memref<128x128xbf16, #tpu.memory_space<vmem>>, vector<128x128xbf16>,
    %cst_5 = arith.constant dense<0.000000e+00> : vector<128xf32>
    %5 = vector.multi_reduction <add>, %2, %cst_5 [0] : vector<128x128xf32> to vector<128xf32>
    %6 = vector.shape_cast %5 : vector<128xf32> to vector<1x128xf32>
    %7 = arith.mulf %2, %2 : vector<128x128xf32>
    %cst_6 = arith.constant dense<0.000000e+00> : vector<128xf32>
    %8 = vector.multi_reduction <add>, %7, %cst_6 [0] : vector<128x128xf32> to vector<128xf32>
    %9 = vector.shape_cast %8 : vector<128xf32> to vector<1x128xf32>
    %10 = vector.shape_cast %6 : vector<1x128xf32> to vector<1x1x128xf32>
    %11 = vector.shape_cast %10 : vector<1x1x128xf32> to vector<1x1x128xf32>
    %12 = vector.broadcast %11 : vector<1x1x128xf32> to vector<1x8x128xf32>
    %c0_7 = arith.constant 0 : index
    %c0_8 = arith.constant 0 : index
    %c0_9 = arith.constant 0 : index
    %13 = vector.load %arg4[%c0_7, %c0_8, %c0_9] : memref<1x8x128xf32, #tpu.memory_space<vmem>>, vector<1x8x128xf32>
    tpu.vector_store %arg4[%c0_7, %c0_8, %c0_9], %12 {strides = array<i32>} : memref<1x8x128xf32, #tpu.memory_space<vmem>>, vector<1x8x128xf32>,
    %14 = vector.shape_cast %9 : vector<1x128xf32> to vector<1x1x128xf32>
    %15 = vector.shape_cast %14 : vector<1x1x128xf32> to vector<1x1x128xf32>
    %16 = vector.broadcast %15 : vector<1x1x128xf32> to vector<1x8x128xf32>
    %c0_10 = arith.constant 0 : index
    %c0_11 = arith.constant 0 : index
    %c0_12 = arith.constant 0 : index
    %17 = vector.load %arg5[%c0_10, %c0_11, %c0_12] : memref<1x8x128xf32, #tpu.memory_space<vmem>>, vector<1x8x128xf32>
    tpu.vector_store %arg5[%c0_10, %c0_11, %c0_12], %16 {strides = array<i32>} : memref<1x8x128xf32, #tpu.memory_space<vmem>>, vector<1x8x128xf32>,
    return
  }
  func.func @transform_0(%arg0: i32) -> (i32, i32) {
    %c0_i32 = arith.constant 0 : i32
    %c0_i32_0 = arith.constant 0 : i32
    return %arg0, %c0_i32 : i32, i32
  }
  func.func @transform_1(%arg0: i32) -> (i32, i32) {
    %c0_i32 = arith.constant 0 : i32
    %c0_i32_0 = arith.constant 0 : i32
    %c0_i32_1 = arith.constant 0 : i32
    return %c0_i32, %c0_i32_0 : i32, i32
  }
  func.func @transform_2(%arg0: i32) -> (i32, i32) {
    %c0_i32 = arith.constant 0 : i32
    %c0_i32_0 = arith.constant 0 : i32
    return %arg0, %c0_i32 : i32, i32
  }
  func.func @transform_3(%arg0: i32) -> (i32, i32, i32) {
    %c0_i32 = arith.constant 0 : i32
    %c0_i32_0 = arith.constant 0 : i32
    %c0_i32_1 = arith.constant 0 : i32
    return %arg0, %c0_i32, %c0_i32_0 : i32, i32, i32
  }
  func.func @transform_4(%arg0: i32) -> (i32, i32, i32) {
    %c0_i32 = arith.constant 0 : i32
    %c0_i32_0 = arith.constant 0 : i32
    %c0_i32_1 = arith.constant 0 : i32
    return %arg0, %c0_i32, %c0_i32_0 : i32, i32, i32
  }
}

module attributes {stable_mosaic.version = 11 : i64} {
  func.func @conv_stats_kernel(%arg0: i32, %arg1: memref<128x72xbf16, #tpu.memory_space<vmem>>, %arg2: memref<72x128xbf16, #tpu.memory_space<vmem>>, %arg3: memref<128x128xbf16, #tpu.memory_space<vmem>>, %arg4: memref<1x8x128xf32, #tpu.memory_space<vmem>>, %arg5: memref<1x8x128xf32, #tpu.memory_space<vmem>>) attributes {dimension_semantics = [#tpu.dimension_semantics<parallel>], iteration_bounds = array<i64: 1>, scalar_prefetch = 0 : i64, scratch_operands = 0 : i64, tpu.core_type = #tpu.core_type<tc>, window_params = [{transform_indices = @transform_0, window_bounds = array<i64: 128, 72>}, {pipeline_mode = #tpu.pipeline_mode<synchronous>, transform_indices = @transform_1, window_bounds = array<i64: 72, 128>}, {transform_indices = @transform_2, window_bounds = array<i64: 128, 128>}, {transform_indices = @transform_3, window_bounds = array<i64: 1, 8, 128>}, {transform_indices = @transform_4, window_bounds = array<i64: 1, 8, 128>}]} {
    %c0 = arith.constant 0 : index
    %c0_0 = arith.constant 0 : index
    %0 = vector.load %arg1[%c0, %c0_0] : memref<128x72xbf16, #tpu.memory_space<vmem>>, vector<128x72xbf16>
    %c0_1 = arith.constant 0 : index
    %c0_2 = arith.constant 0 : index
    %1 = vector.load %arg2[%c0_1, %c0_2] : memref<72x128xbf16, #tpu.memory_space<vmem>>, vector<72x128xbf16>
    %cst = arith.constant dense<0.000000e+00> : vector<128x128xf32>
    %2 = tpu.matmul %0, %1, %cst {dimension_numbers = #tpu.dot_dimension_numbers<[1], [0], [0], [1], [0, 0, 1, 1], [], []>} : vector<128x72xbf16>, vector<72x128xbf16>, vector<128x128xf32> -> vector<128x128xf32>
    %3 = arith.truncf %2 : vector<128x128xf32> to vector<128x128xbf16>
    %c0_3 = arith.constant 0 : index
    %c0_4 = arith.constant 0 : index
    %4 = vector.load %arg3[%c0_3, %c0_4] : memref<128x128xbf16, #tpu.memory_space<vmem>>, vector<128x128xbf16>
    tpu.vector_store %arg3[%c0_3, %c0_4], %3 {strides = array<i32>} : memref<128x128xbf16, #tpu.memory_space<vmem>>, vector<128x128xbf16>,
    %cst_5 = arith.constant dense<0.000000e+00> : vector<128xf32>
    %5 = vector.multi_reduction <add>, %2, %cst_5 [0] : vector<128x128xf32> to vector<128xf32>
    %6 = vector.shape_cast %5 : vector<128xf32> to vector<1x128xf32>
    %7 = arith.mulf %2, %2 : vector<128x128xf32>
    %cst_6 = arith.constant dense<0.000000e+00> : vector<128xf32>
    %8 = vector.multi_reduction <add>, %7, %cst_6 [0] : vector<128x128xf32> to vector<128xf32>
    %9 = vector.shape_cast %8 : vector<128xf32> to vector<1x128xf32>
    %10 = vector.shape_cast %6 : vector<1x128xf32> to vector<1x1x128xf32>
    %11 = vector.shape_cast %10 : vector<1x1x128xf32> to vector<1x1x128xf32>
    %12 = vector.broadcast %11 : vector<1x1x128xf32> to vector<1x8x128xf32>
    %c0_7 = arith.constant 0 : index
    %c0_8 = arith.constant 0 : index
    %c0_9 = arith.constant 0 : index
    %13 = vector.load %arg4[%c0_7, %c0_8, %c0_9] : memref<1x8x128xf32, #tpu.memory_space<vmem>>, vector<1x8x128xf32>
    tpu.vector_store %arg4[%c0_7, %c0_8, %c0_9], %12 {strides = array<i32>} : memref<1x8x128xf32, #tpu.memory_space<vmem>>, vector<1x8x128xf32>,
    %14 = vector.shape_cast %9 : vector<1x128xf32> to vector<1x1x128xf32>
    %15 = vector.shape_cast %14 : vector<1x1x128xf32> to vector<1x1x128xf32>
    %16 = vector.broadcast %15 : vector<1x1x128xf32> to vector<1x8x128xf32>
    %c0_10 = arith.constant 0 : index
    %c0_11 = arith.constant 0 : index
    %c0_12 = arith.constant 0 : index
    %17 = vector.load %arg5[%c0_10, %c0_11, %c0_12] : memref<1x8x128xf32, #tpu.memory_space<vmem>>, vector<1x8x128xf32>
    tpu.vector_store %arg5[%c0_10, %c0_11, %c0_12], %16 {strides = array<i32>} : memref<1x8x128xf32, #tpu.memory_space<vmem>>, vector<1x8x128xf32>,
    return
  }
  func.func @transform_0(%arg0: i32) -> (i32, i32) {
    %c0_i32 = arith.constant 0 : i32
    %c0_i32_0 = arith.constant 0 : i32
    return %arg0, %c0_i32 : i32, i32
  }
  func.func @transform_1(%arg0: i32) -> (i32, i32) {
    %c0_i32 = arith.constant 0 : i32
    %c0_i32_0 = arith.constant 0 : i32
    %c0_i32_1 = arith.constant 0 : i32
    return %c0_i32, %c0_i32_0 : i32, i32
  }
  func.func @transform_2(%arg0: i32) -> (i32, i32) {
    %c0_i32 = arith.constant 0 : i32
    %c0_i32_0 = arith.constant 0 : i32
    return %arg0, %c0_i32 : i32, i32
  }
  func.func @transform_3(%arg0: i32) -> (i32, i32, i32) {
    %c0_i32 = arith.constant 0 : i32
    %c0_i32_0 = arith.constant 0 : i32
    %c0_i32_1 = arith.constant 0 : i32
    return %arg0, %c0_i32, %c0_i32_0 : i32, i32, i32
  }
  func.func @transform_4(%arg0: i32) -> (i32, i32, i32) {
    %c0_i32 = arith.constant 0 : i32
    %c0_i32_0 = arith.constant 0 : i32
    %c0_i32_1 = arith.constant 0 : i32
    return %arg0, %c0_i32, %c0_i32_0 : i32, i32, i32
  }
}

module attributes {stable_mosaic.version = 11 : i64} {
  func.func @bn_lrelu_kernel(%arg0: i32, %arg1: memref<128x128xbf16, #tpu.memory_space<vmem>>, %arg2: memref<1x128xf32, #tpu.memory_space<vmem>>, %arg3: memref<1x128xf32, #tpu.memory_space<vmem>>, %arg4: memref<128x128xf32, #tpu.memory_space<vmem>>) attributes {dimension_semantics = [#tpu.dimension_semantics<parallel>], iteration_bounds = array<i64: 1>, scalar_prefetch = 0 : i64, scratch_operands = 0 : i64, tpu.core_type = #tpu.core_type<tc>, window_params = [{transform_indices = @transform_0, window_bounds = array<i64: 128, 128>}, {pipeline_mode = #tpu.pipeline_mode<synchronous>, transform_indices = @transform_1, window_bounds = array<i64: 1, 128>}, {pipeline_mode = #tpu.pipeline_mode<synchronous>, transform_indices = @transform_2, window_bounds = array<i64: 1, 128>}, {transform_indices = @transform_3, window_bounds = array<i64: 128, 128>}]} {
    %c0 = arith.constant 0 : index
    %c0_0 = arith.constant 0 : index
    %0 = vector.load %arg1[%c0, %c0_0] : memref<128x128xbf16, #tpu.memory_space<vmem>>, vector<128x128xbf16>
    %1 = arith.extf %0 : vector<128x128xbf16> to vector<128x128xf32>
    %c0_1 = arith.constant 0 : index
    %c0_2 = arith.constant 0 : index
    %2 = vector.load %arg2[%c0_1, %c0_2] : memref<1x128xf32, #tpu.memory_space<vmem>>, vector<1x128xf32>
    %3 = vector.broadcast %2 : vector<1x128xf32> to vector<128x128xf32>
    %4 = arith.mulf %1, %3 : vector<128x128xf32>
    %c0_3 = arith.constant 0 : index
    %c0_4 = arith.constant 0 : index
    %5 = vector.load %arg3[%c0_3, %c0_4] : memref<1x128xf32, #tpu.memory_space<vmem>>, vector<1x128xf32>
    %6 = vector.broadcast %5 : vector<1x128xf32> to vector<128x128xf32>
    %7 = arith.addf %4, %6 : vector<128x128xf32>
    %cst = arith.constant 0.000000e+00 : f32
    %8 = vector.broadcast %cst : f32 to vector<128x128xf32>
    %9 = arith.cmpf oge, %7, %8 : vector<128x128xf32>
    %cst_5 = arith.constant 2.000000e-01 : f32
    %10 = vector.broadcast %cst_5 : f32 to vector<128x128xf32>
    %11 = arith.mulf %10, %7 : vector<128x128xf32>
    %12 = arith.select %9, %7, %11 : vector<128x128xi1>, vector<128x128xf32>
    %c0_6 = arith.constant 0 : index
    %c0_7 = arith.constant 0 : index
    %13 = vector.load %arg4[%c0_6, %c0_7] : memref<128x128xf32, #tpu.memory_space<vmem>>, vector<128x128xf32>
    tpu.vector_store %arg4[%c0_6, %c0_7], %12 {strides = array<i32>} : memref<128x128xf32, #tpu.memory_space<vmem>>, vector<128x128xf32>,
    return
  }
  func.func @transform_0(%arg0: i32) -> (i32, i32) {
    %c0_i32 = arith.constant 0 : i32
    %c0_i32_0 = arith.constant 0 : i32
    return %arg0, %c0_i32 : i32, i32
  }
  func.func @transform_1(%arg0: i32) -> (i32, i32) {
    %c0_i32 = arith.constant 0 : i32
    %c0_i32_0 = arith.constant 0 : i32
    %c0_i32_1 = arith.constant 0 : i32
    return %c0_i32, %c0_i32_0 : i32, i32
  }
  func.func @transform_2(%arg0: i32) -> (i32, i32) {
    %c0_i32 = arith.constant 0 : i32
    %c0_i32_0 = arith.constant 0 : i32
    %c0_i32_1 = arith.constant 0 : i32
    return %c0_i32, %c0_i32_0 : i32, i32
  }
  func.func @transform_3(%arg0: i32) -> (i32, i32) {
    %c0_i32 = arith.constant 0 : i32
    %c0_i32_0 = arith.constant 0 : i32
    return %arg0, %c0_i32 : i32, i32
  }
}

</mosaic_0001>

<bundles_post_ra>
// kernel: down_forward.3
= control target key start
LH: loop header
LB: loop body
LE: loop exit
PB: predicated region body
PF: predicated region fallthrough
CT: control target
= control target key end

     0   :  { %vm116_vm0 = vcmask 1041408   ;;  %vm91_vm1 = vcmask 293888   ;;  %s615_s1 = inlined_call_operand.vmem [shape: bf16[36,128], index: 1, kind: input, shape index: {}]   ;;  %s616_s0 = inlined_call_operand.vmem [shape: bf16[128,36], index: 0, kind: input, shape index: {}]   ;;  %s617_s2 = inlined_call_operand.vmem [shape: bf16[128,128], index: 2, kind: output, shape index: {0}]   ;;  %s618_s3 = inlined_call_operand.vmem [shape: f32[1,8,128], index: 3, kind: output, shape index: {1}]   ;;  %s619_s4 = inlined_call_operand.vmem [shape: f32[1,8,128], index: 4, kind: output, shape index: {2}]  }
   0x1   :  { %v508_v0 = vld [vmem:[%s615_s1 + $0x10] ss:$0 sps:$4 sm:$0x33]   ;;  %v509_v1 = vld [vmem:[%s615_s1 + $0x8] sm:$0xff]   ;;  %v511_v3 = vld [vmem:[%s616_s0] sm:$0xff]  }
   0x2   :  { %506 = vmatprep.subr.msk.bf16.mxu0 %vm116_vm0, %v508_v0  ;;  %v118_v2 = vsel %vm116_vm0, %v508_v0, 0  ;;  %507 = vmatprep.subr.msk.bf16.mxu1 %vm116_vm0, %v508_v0  ;;  %v510_v4 = vld [vmem:[%s615_s1] sm:$0xff]   ;;  %v512_v6 = vld [vmem:[%s616_s0 + $0x8] sm:$0xff]   ;;  %v513_v8 = vld [vmem:[%s616_s0 + $0x10] sm:$0xff]  }
   0x3   :  { %479 = vmatpush3.bf16.msra.mxu0 %v118_v2  ;;  %503 = vmatpush3.bf16.msra.mxu1 %v118_v2  ;;  %v515_v5 = vld [vmem:[%s616_s0 + $0x20] sm:$0xff]   ;;  %v516_v7 = vld [vmem:[%s616_s0 + $0x28] sm:$0xff]   ;;  %v517_v9 = vld [vmem:[%s616_s0 + $0x30] sm:$0xff]  }
   0x4   :  { %480 = vmatprep.subr.bf16.mxu0 %v509_v1  ;;  %501 = vmatprep.subr.bf16.mxu1 %v509_v1  ;;  %v514_v10 = vld [vmem:[%s616_s0 + $0x18] sm:$0xff]  }
   0x5   :  { %484 = vmatprep.mubr.msk.bf16.mxu0 %vm91_vm1, %v511_v3  ;;  %492 = vmatprep.mubr.msk.bf16.mxu1 %vm91_vm1, %v515_v5  ;;  %v518_v11 = vld [vmem:[%s616_s0 + $0x38] sm:$0xff]  }
   0x7   :  { %481 = vmatpush3.bf16.msra.mxu0 %v509_v1  ;;  %504 = vmatpush3.bf16.msra.mxu1 %v509_v1 }
   0x8   :  { %482 = vmatprep.subr.bf16.mxu0 %v510_v4  ;;  %502 = vmatprep.subr.bf16.mxu1 %v510_v4 }
   0xb   :  { %483 = vmatpush3.bf16.msra.mxu0 %v510_v4  ;;  %505 = vmatpush3.bf16.msra.mxu1 %v510_v4 }
   0xe   :  { %485 = vmatmul.mubr.msk.bf16.vlgmr.msra.gmra.mxu0 %vm91_vm1, %v512_v6  ;;  %493 = vmatmul.mubr.msk.bf16.vlgmr.msra.gmra.mxu1 %vm91_vm1, %v516_v7 }
   0xf   :  { %488 = vmatprep.mubr.msk.bf16.mxu0 %vm91_vm1, %v513_v8  ;;  %496 = vmatprep.mubr.msk.bf16.mxu1 %vm91_vm1, %v517_v9 }
  0x16   :  { %489 = vmatmul.mubr.msk.bf16.gmra.mxu0 %vm91_vm1, %v514_v10  ;;  %497 = vmatmul.mubr.msk.bf16.gmra.mxu1 %vm91_vm1, %v518_v11 }
  0xce   :  { %v486_v12 = vpop.f32.mrf.mxu0  ;;  %v494_v13 = vpop.f32.mrf.mxu1 }
  0xcf   :  { %v320_v29 = vmul.f32 %v486_v12, %v486_v12  ;;  %v328_v63 = vmul.f32 %v494_v13, %v494_v13 }
  0xd0   :  { %v154_v14 = vpop.f32.mrf.mxu0  ;;  %v186_v15 = vpop.f32.mrf.mxu1 }
  0xd1   :  { %v318_v20 = vmul.f32 %v154_v14, %v154_v14  ;;  %v326_v57 = vmul.f32 %v186_v15, %v186_v15 }
  0xd2   :  { %v487_v16 = vpop.f32.mrf.mxu0  ;;  %v495_v17 = vpop.f32.mrf.mxu1 }
  0xd3   :  { %v428_v18 = vpack.c.bf16 %v487_v16, %v486_v12  ;;  %v448_v19 = vpack.c.bf16 %v495_v17, %v494_v13  ;;  %v321_v34 = vmul.f32 %v487_v16, %v487_v16  ;;  %v329_v2 = vmul.f32 %v495_v17, %v495_v17 }
  0xd4   :  { %v157_v21 = vpop.f32.mrf.mxu0  ;;  %v189_v22 = vpop.f32.mrf.mxu1 }
  0xd5   :  { %460 = vst [vmem:[%s617_s2 + $0x8] sm:$0xff] %v428_v18   ;;  %v423_v23 = vpack.c.bf16 %v157_v21, %v154_v14  ;;  %v297_v24 = vadd.f32 %v157_v21, %v154_v14  ;;  %v319_v25 = vmul.f32 %v157_v21, %v157_v21  ;;  %464 = vst [vmem:[%s617_s2 + $0x28] sm:$0xff] %v448_v19  }
  0xd6   :  { %v443_v26 = vpack.c.bf16 %v189_v22, %v186_v15  ;;  %v490_v27 = vpop.f32.mrf.mxu0  ;;  %v498_v28 = vpop.f32.mrf.mxu1  ;;  %v327_v61 = vmul.f32 %v189_v22, %v189_v22 }
  0xd7   :  { %424 = vst [vmem:[%s617_s2] sm:$0xff] %v423_v23   ;;  %v298_v30 = vadd.f32 %v486_v12, %v297_v24  ;;  %v334_v31 = vadd.f32 %v319_v25, %v318_v20  ;;  %v324_v51 = vmul.f32 %v490_v27, %v490_v27  ;;  %v332_v11 = vmul.f32 %v498_v28, %v498_v28 }
  0xd8   :  { %463 = vst [vmem:[%s617_s2 + $0x20] sm:$0xff] %v443_v26   ;;  %v170_v32 = vpop.f32.mrf.mxu0  ;;  %v202_v33 = vpop.f32.mrf.mxu1 }
  0xd9   :  { %v335_v35 = vadd.f32 %v334_v31, %v320_v29  ;;  %v299_v36 = vadd.f32 %v487_v16, %v298_v30  ;;  %v322_v40 = vmul.f32 %v170_v32, %v170_v32  ;;  %v330_v6 = vmul.f32 %v202_v33, %v202_v33 }
  0xda   :  { %v491_v37 = vpop.f32.mrf.mxu0  ;;  %v499_v38 = vpop.f32.mrf.mxu1 }
  0xdb   :  { %v300_v39 = vadd.f32 %v299_v36, %v170_v32  ;;  %v336_v41 = vadd.f32 %v335_v35, %v321_v34  ;;  %v438_v42 = vpack.c.bf16 %v491_v37, %v490_v27  ;;  %v458_v44 = vpack.c.bf16 %v499_v38, %v498_v28 }
  0xdc   :  { %v173_v43 = vpop.f32.mrf.mxu0  ;;  %v205_v45 = vpop.f32.mrf.mxu1  ;;  %v325_v54 = vmul.f32 %v491_v37, %v491_v37  ;;  %v333_v16 = vmul.f32 %v499_v38, %v499_v38 }
  0xdd   :  { %v337_v46 = vadd.f32 %v336_v41, %v322_v40  ;;  %462 = vst [vmem:[%s617_s2 + $0x18] sm:$0xff] %v438_v42   ;;  %v433_v47 = vpack.c.bf16 %v173_v43, %v170_v32  ;;  %v301_v48 = vadd.f32 %v300_v39, %v173_v43  ;;  %v323_v49 = vmul.f32 %v173_v43, %v173_v43 }
  0xde   :  { %466 = vst [vmem:[%s617_s2 + $0x38] sm:$0xff] %v458_v44   ;;  %v453_v50 = vpack.c.bf16 %v205_v45, %v202_v33  ;;  %v331_v10 = vmul.f32 %v205_v45, %v205_v45 }
  0xdf   :  { %461 = vst [vmem:[%s617_s2 + $0x10] sm:$0xff] %v433_v47   ;;  %v302_v52 = vadd.f32 %v490_v27, %v301_v48  ;;  %v338_v53 = vadd.f32 %v337_v46, %v323_v49 }
  0xe0   :  { %465 = vst [vmem:[%s617_s2 + $0x30] sm:$0xff] %v453_v50  }
  0xe1   :  { %v303_v55 = vadd.f32 %v491_v37, %v302_v52  ;;  %v339_v56 = vadd.f32 %v338_v53, %v324_v51 }
  0xe3   :  { %v340_v58 = vadd.f32 %v339_v56, %v325_v54  ;;  %v304_v59 = vadd.f32 %v303_v55, %v186_v15 }
  0xe5   :  { %v305_v60 = vadd.f32 %v304_v59, %v189_v22  ;;  %v341_v62 = vadd.f32 %v340_v58, %v326_v57 }
  0xe7   :  { %v306_v0 = vadd.f32 %v494_v13, %v305_v60  ;;  %v342_v1 = vadd.f32 %v341_v62, %v327_v61 }
  0xe9   :  { %v343_v3 = vadd.f32 %v342_v1, %v328_v63  ;;  %v307_v4 = vadd.f32 %v495_v17, %v306_v0 }
  0xeb   :  { %v308_v5 = vadd.f32 %v307_v4, %v202_v33  ;;  %v344_v7 = vadd.f32 %v343_v3, %v329_v2 }
  0xed   :  { %v345_v8 = vadd.f32 %v344_v7, %v330_v6  ;;  %v309_v9 = vadd.f32 %v308_v5, %v205_v45 }
  0xef   :  { %v310_v12 = vadd.f32 %v498_v28, %v309_v9  ;;  %v346_v14 = vadd.f32 %v345_v8, %v331_v10 }
  0xf1   :  { %v311_v15 = vadd.f32 %v499_v38, %v310_v12  ;;  %v347_v18 = vadd.f32 %v346_v14, %v332_v11 }
  0xf3   :  { %v312_v19 = vrot.slane %v311_v15, 4  ;;  %v348_v20 = vadd.f32 %v347_v18, %v333_v16 }
  0xf5   :  { %v313_v21 = vadd.f32 %v312_v19, %v311_v15  ;;  %v349_v13 = vrot.slane %v348_v20, 4 }
  0xf7   :  { %v314_v22 = vrot.slane %v313_v21, 2  ;;  %v350_v23 = vadd.f32 %v349_v13, %v348_v20 }
  0xf9   :  { %v315_v24 = vadd.f32 %v314_v22, %v313_v21  ;;  %v351_v17 = vrot.slane %v350_v23, 2 }
  0xfb   :  { %v316_v25 = vrot.slane %v315_v24, 1  ;;  %v352_v26 = vadd.f32 %v351_v17, %v350_v23 }
  0xfd   :  { %v317_v27 = vadd.f32 %v316_v25, %v315_v24  ;;  %v353_v29 = vrot.slane %v352_v26, 1 }
  0xff   :  { %v354_v30 = vadd.f32 %v353_v29, %v352_v26  ;;  %355 = vst [vmem:[%s618_s3] sm:$0xff] %v317_v27 }
 0x101   :  { %356 = vst [vmem:[%s619_s4] sm:$0xff] %v354_v30 }

// kernel: down_forward.5
= control target key start
LH: loop header
LB: loop body
LE: loop exit
PB: predicated region body
PF: predicated region fallthrough
CT: control target
= control target key end

     0   :  { %s335_s0 = inlined_call_operand.vmem [shape: bf16[128,128], index: 0, kind: input, shape index: {}]   ;;  %s336_s1 = inlined_call_operand.vmem [shape: f32[1,128], index: 1, kind: input, shape index: {}]   ;;  %s337_s2 = inlined_call_operand.vmem [shape: f32[1,128], index: 2, kind: input, shape index: {}]   ;;  %s338_s3 = inlined_call_operand.vmem [shape: f32[128,128], index: 3, kind: output, shape index: {}]  }
   0x1   :  { %v163_v0 = vld [vmem:[%s335_s0] sm:$0xff]   ;;  %v194_v4 = vld [vmem:[%s335_s0 + $0x8] sm:$0xff]   ;;  %v195_v5 = vld [vmem:[%s335_s0 + $0x10] sm:$0xff]  }
   0x2   :  { %v227_v1 = vld [vmem:[%s336_s1] ss:$0 sm:$0xff]  ;;  %v164_v2 = vunpack.c.l.bf16 %v163_v0  ;;  %v165_v3 = vunpack.c.h.bf16 %v163_v0  ;;  %v196_v6 = vld [vmem:[%s335_s0 + $0x18] sm:$0xff]   ;;  %v168_v8 = vunpack.c.l.bf16 %v194_v4  ;;  %v169_v9 = vunpack.c.h.bf16 %v194_v4  ;;  %v198_v36 = vld [vmem:[%s335_s0 + $0x28] sm:$0xff]  }
   0x3   :  { %v241_v7 = vld [vmem:[%s337_s2] ss:$0 sm:$0xff]  ;;  %v172_v10 = vunpack.c.l.bf16 %v195_v5  ;;  %v173_v11 = vunpack.c.h.bf16 %v195_v5  ;;  %v176_v14 = vunpack.c.l.bf16 %v196_v6  ;;  %v177_v15 = vunpack.c.h.bf16 %v196_v6  ;;  %v199_v48 = vld [vmem:[%s335_s0 + $0x30] sm:$0xff]   ;;  %v200_v55 = vld [vmem:[%s335_s0 + $0x38] sm:$0xff]  }
   0x4   :  { %v53_v12 = vmul.f32 %v164_v2, %v227_v1  ;;  %v54_v13 = vmul.f32 %v165_v3, %v227_v1  ;;  %v55_v16 = vmul.f32 %v168_v8, %v227_v1  ;;  %v56_v17 = vmul.f32 %v169_v9, %v227_v1  ;;  %v197_v28 = vld [vmem:[%s335_s0 + $0x20] sm:$0xff]  }
   0x5   :  { %v57_v18 = vmul.f32 %v172_v10, %v227_v1  ;;  %v58_v19 = vmul.f32 %v173_v11, %v227_v1  ;;  %v59_v22 = vmul.f32 %v176_v14, %v227_v1  ;;  %v60_v23 = vmul.f32 %v177_v15, %v227_v1 }
   0x6   :  { %v76_v20 = vadd.f32 %v241_v7, %v53_v12  ;;  %v77_v21 = vadd.f32 %v241_v7, %v54_v13  ;;  %v78_v24 = vadd.f32 %v241_v7, %v55_v16  ;;  %v79_v25 = vadd.f32 %v241_v7, %v56_v17 }
   0x7   :  { %v80_v26 = vadd.f32 %v241_v7, %v57_v18  ;;  %v81_v27 = vadd.f32 %v241_v7, %v58_v19  ;;  %v82_v41 = vadd.f32 %v241_v7, %v59_v22  ;;  %v83_v42 = vadd.f32 %v241_v7, %v60_v23 }
   0x8   :  { %vm92_vm0 = vcmp.ge.f32.partialorder %v76_v20, 0.0  ;;  %v108_v29 = vmul.f32 0.2, %v76_v20  ;;  %vm93_vm1 = vcmp.ge.f32.partialorder %v77_v21, 0.0  ;;  %v109_v30 = vmul.f32 0.2, %v77_v21 }
   0x9   :  { %vm94_vm2 = vcmp.ge.f32.partialorder %v78_v24, 0.0  ;;  %v110_v31 = vmul.f32 0.2, %v78_v24  ;;  %vm95_vm3 = vcmp.ge.f32.partialorder %v79_v25, 0.0  ;;  %v111_v32 = vmul.f32 0.2, %v79_v25 }
   0xa   :  { %v124_v33 = vsel %vm92_vm0, %v76_v20, %v108_v29  ;;  %v125_v34 = vsel %vm93_vm1, %v77_v21, %v109_v30  ;;  %vm96_vm4 = vcmp.ge.f32.partialorder %v80_v26, 0.0  ;;  %v112_v35 = vmul.f32 0.2, %v80_v26 }
   0xb   :  { %140 = vst [vmem:[%s338_s3] sm:$0xff] %v124_v33  ;;  %141 = vst [vmem:[%s338_s3 + $0x8] sm:$0xff] %v125_v34  ;;  %v126_v37 = vsel %vm94_vm2, %v78_v24, %v110_v31  ;;  %v127_v38 = vsel %vm95_vm3, %v79_v25, %v111_v32  ;;  %vm97_vm5 = vcmp.ge.f32.partialorder %v81_v27, 0.0  ;;  %v113_v39 = vmul.f32 0.2, %v81_v27 }
   0xc   :  { %142 = vst [vmem:[%s338_s3 + $0x10] sm:$0xff] %v126_v37  ;;  %143 = vst [vmem:[%s338_s3 + $0x18] sm:$0xff] %v127_v38  ;;  %v128_v40 = vsel %vm96_vm4, %v80_v26, %v112_v35  ;;  %v180_v43 = vunpack.c.l.bf16 %v197_v28  ;;  %v181_v45 = vunpack.c.h.bf16 %v197_v28  ;;  %v184_v46 = vunpack.c.l.bf16 %v198_v36 }
   0xd   :  { %144 = vst [vmem:[%s338_s3 + $0x20] sm:$0xff] %v128_v40  ;;  %v129_v44 = vsel %vm97_vm5, %v81_v27, %v113_v39  ;;  %v185_v47 = vunpack.c.h.bf16 %v198_v36  ;;  %vm98_vm6 = vcmp.ge.f32.partialorder %v82_v41, 0.0  ;;  %v114_v49 = vmul.f32 0.2, %v82_v41 }
   0xe   :  { %145 = vst [vmem:[%s338_s3 + $0x28] sm:$0xff] %v129_v44  ;;  %vm99_vm7 = vcmp.ge.f32.partialorder %v83_v42, 0.0  ;;  %v115_v50 = vmul.f32 0.2, %v83_v42  ;;  %v61_v51 = vmul.f32 %v180_v43, %v227_v1  ;;  %v62_v52 = vmul.f32 %v181_v45, %v227_v1 }
   0xf   :  { %v63_v53 = vmul.f32 %v184_v46, %v227_v1  ;;  %v64_v54 = vmul.f32 %v185_v47, %v227_v1  ;;  %v130_v56 = vsel %vm98_vm6, %v82_v41, %v114_v49  ;;  %v188_v58 = vunpack.c.l.bf16 %v199_v48 }
  0x10   :  { %v131_v57 = vsel %vm99_vm7, %v83_v42, %v115_v50  ;;  %v189_v59 = vunpack.c.h.bf16 %v199_v48  ;;  %146 = vst [vmem:[%s338_s3 + $0x30] sm:$0xff] %v130_v56  ;;  %v84_v60 = vadd.f32 %v241_v7, %v61_v51  ;;  %v85_v61 = vadd.f32 %v241_v7, %v62_v52 }
  0x11   :  { %147 = vst [vmem:[%s338_s3 + $0x38] sm:$0xff] %v131_v57  ;;  %v86_v62 = vadd.f32 %v241_v7, %v63_v53  ;;  %v87_v63 = vadd.f32 %v241_v7, %v64_v54  ;;  %v65_v0 = vmul.f32 %v188_v58, %v227_v1  ;;  %v192_v3 = vunpack.c.l.bf16 %v200_v55 }
  0x12   :  { %v66_v2 = vmul.f32 %v189_v59, %v227_v1  ;;  %v193_v4 = vunpack.c.h.bf16 %v200_v55  ;;  %vm100_vm8 = vcmp.ge.f32.partialorder %v84_v60, 0.0  ;;  %v116_v5 = vmul.f32 0.2, %v84_v60 }
  0x13   :  { %vm101_vm9 = vcmp.ge.f32.partialorder %v85_v61, 0.0  ;;  %v117_v6 = vmul.f32 0.2, %v85_v61  ;;  %vm102_vm10 = vcmp.ge.f32.partialorder %v86_v62, 0.0  ;;  %v118_v8 = vmul.f32 0.2, %v86_v62 }
  0x14   :  { %vm103_vm11 = vcmp.ge.f32.partialorder %v87_v63, 0.0  ;;  %v119_v9 = vmul.f32 0.2, %v87_v63  ;;  %v132_v10 = vsel %vm100_vm8, %v84_v60, %v116_v5  ;;  %v88_v12 = vadd.f32 %v241_v7, %v65_v0 }
  0x15   :  { %v133_v11 = vsel %vm101_vm9, %v85_v61, %v117_v6  ;;  %v89_v13 = vadd.f32 %v241_v7, %v66_v2  ;;  %148 = vst [vmem:[%s338_s3 + $0x40] sm:$0xff] %v132_v10  ;;  %v134_v14 = vsel %vm102_vm10, %v86_v62, %v118_v8  ;;  %v67_v16 = vmul.f32 %v192_v3, %v227_v1 }
  0x16   :  { %149 = vst [vmem:[%s338_s3 + $0x48] sm:$0xff] %v133_v11  ;;  %v135_v15 = vsel %vm103_vm11, %v87_v63, %v119_v9  ;;  %v68_v17 = vmul.f32 %v193_v4, %v227_v1  ;;  %150 = vst [vmem:[%s338_s3 + $0x50] sm:$0xff] %v134_v14  ;;  %vm104_vm12 = vcmp.ge.f32.partialorder %v88_v12, 0.0  ;;  %v120_v18 = vmul.f32 0.2, %v88_v12 }
  0x17   :  { %151 = vst [vmem:[%s338_s3 + $0x58] sm:$0xff] %v135_v15  ;;  %vm105_vm13 = vcmp.ge.f32.partialorder %v89_v13, 0.0  ;;  %v121_v19 = vmul.f32 0.2, %v89_v13  ;;  %v90_v20 = vadd.f32 %v241_v7, %v67_v16 }
  0x18   :  { %v91_v21 = vadd.f32 %v241_v7, %v68_v17  ;;  %v136_v22 = vsel %vm104_vm12, %v88_v12, %v120_v18 }
  0x19   :  { %v137_v23 = vsel %vm105_vm13, %v89_v13, %v121_v19  ;;  %152 = vst [vmem:[%s338_s3 + $0x60] sm:$0xff] %v136_v22  ;;  %vm106_vm14 = vcmp.ge.f32.partialorder %v90_v20, 0.0  ;;  %v122_v1 = vmul.f32 0.2, %v90_v20 }
  0x1a   :  { %153 = vst [vmem:[%s338_s3 + $0x68] sm:$0xff] %v137_v23  ;;  %vm107_vm15 = vcmp.ge.f32.partialorder %v91_v21, 0.0  ;;  %v123_v24 = vmul.f32 0.2, %v91_v21 }
  0x1b   :  { %v138_v25 = vsel %vm106_vm14, %v90_v20, %v122_v1 }
  0x1c   :  { %v139_v26 = vsel %vm107_vm15, %v91_v21, %v123_v24  ;;  %154 = vst [vmem:[%s338_s3 + $0x70] sm:$0xff] %v138_v25 }
  0x1d   :  { %155 = vst [vmem:[%s338_s3 + $0x78] sm:$0xff] %v139_v26 }

// kernel: down_forward.4
= control target key start
LH: loop header
LB: loop body
LE: loop exit
PB: predicated region body
PF: predicated region fallthrough
CT: control target
= control target key end

     0   :  { %vm132_vm0 = vcmask 1043456   ;;  %vm107_vm1 = vcmask 588800   ;;  %s651_s1 = inlined_call_operand.vmem [shape: bf16[72,128], index: 1, kind: input, shape index: {}]   ;;  %s652_s0 = inlined_call_operand.vmem [shape: bf16[128,72], index: 0, kind: input, shape index: {}]   ;;  %s653_s2 = inlined_call_operand.vmem [shape: bf16[128,128], index: 2, kind: output, shape index: {0}]   ;;  %s654_s3 = inlined_call_operand.vmem [shape: f32[1,8,128], index: 3, kind: output, shape index: {1}]   ;;  %s655_s4 = inlined_call_operand.vmem [shape: f32[1,8,128], index: 4, kind: output, shape index: {2}]  }
   0x1   :  { %v536_v0 = vld [vmem:[%s651_s1 + $0x20] ss:$0 sps:$4 sm:$0xff]   ;;  %v537_v1 = vld [vmem:[%s651_s1 + $0x18] sm:$0xff]   ;;  %v538_v3 = vld [vmem:[%s651_s1 + $0x10] sm:$0xff]  }
   0x2   :  { %534 = vmatprep.subr.msk.bf16.mxu0 %vm132_vm0, %v536_v0  ;;  %v134_v2 = vsel %vm132_vm0, %v536_v0, 0  ;;  %535 = vmatprep.subr.msk.bf16.mxu1 %vm132_vm0, %v536_v0  ;;  %v541_v4 = vld [vmem:[%s652_s0] sm:$0xff]   ;;  %v539_v5 = vld [vmem:[%s651_s1 + $0x8] sm:$0xff]   ;;  %v543_v10 = vld [vmem:[%s652_s0 + $0x10] sm:$0xff]  }
   0x3   :  { %499 = vmatpush3.bf16.msra.mxu0 %v134_v2  ;;  %529 = vmatpush3.bf16.msra.mxu1 %v134_v2  ;;  %v545_v6 = vld [vmem:[%s652_s0 + $0x20] sm:$0xff]   ;;  %v542_v8 = vld [vmem:[%s652_s0 + $0x8] sm:$0xff]   ;;  %v547_v11 = vld [vmem:[%s652_s0 + $0x30] sm:$0xff]  }
   0x4   :  { %500 = vmatprep.subr.bf16.mxu0 %v537_v1  ;;  %525 = vmatprep.subr.bf16.mxu1 %v537_v1  ;;  %v540_v7 = vld [vmem:[%s651_s1] sm:$0xff]   ;;  %v546_v9 = vld [vmem:[%s652_s0 + $0x28] sm:$0xff]   ;;  %v544_v12 = vld [vmem:[%s652_s0 + $0x18] sm:$0xff]  }
   0x5   :  { %508 = vmatprep.mubr.msk.bf16.mxu0 %vm107_vm1, %v541_v4  ;;  %516 = vmatprep.mubr.msk.bf16.mxu1 %vm107_vm1, %v545_v6  ;;  %v548_v13 = vld [vmem:[%s652_s0 + $0x38] sm:$0xff]  }
   0x7   :  { %501 = vmatpush3.bf16.msra.mxu0 %v537_v1  ;;  %530 = vmatpush3.bf16.msra.mxu1 %v537_v1 }
   0x8   :  { %502 = vmatprep.subr.bf16.mxu0 %v538_v3  ;;  %526 = vmatprep.subr.bf16.mxu1 %v538_v3 }
   0xb   :  { %503 = vmatpush3.bf16.msra.mxu0 %v538_v3  ;;  %531 = vmatpush3.bf16.msra.mxu1 %v538_v3 }
   0xc   :  { %504 = vmatprep.subr.bf16.mxu0 %v539_v5  ;;  %527 = vmatprep.subr.bf16.mxu1 %v539_v5 }
   0xf   :  { %505 = vmatpush3.bf16.msra.mxu0 %v539_v5  ;;  %532 = vmatpush3.bf16.msra.mxu1 %v539_v5 }
  0x10   :  { %506 = vmatprep.subr.bf16.mxu0 %v540_v7  ;;  %528 = vmatprep.subr.bf16.mxu1 %v540_v7 }
  0x13   :  { %507 = vmatpush3.bf16.msra.mxu0 %v540_v7  ;;  %533 = vmatpush3.bf16.msra.mxu1 %v540_v7 }
  0x16   :  { %509 = vmatmul.mubr.msk.bf16.vlgmr.msra.gmra.mxu0 %vm107_vm1, %v542_v8  ;;  %517 = vmatmul.mubr.msk.bf16.vlgmr.msra.gmra.mxu1 %vm107_vm1, %v546_v9 }
  0x17   :  { %512 = vmatprep.mubr.msk.bf16.mxu0 %vm107_vm1, %v543_v10  ;;  %520 = vmatprep.mubr.msk.bf16.mxu1 %vm107_vm1, %v547_v11 }
  0x1e   :  { %513 = vmatmul.mubr.msk.bf16.gmra.mxu0 %vm107_vm1, %v544_v12  ;;  %521 = vmatmul.mubr.msk.bf16.gmra.mxu1 %vm107_vm1, %v548_v13 }
  0xd6   :  { %v510_v14 = vpop.f32.mrf.mxu0  ;;  %v518_v15 = vpop.f32.mrf.mxu1 }
  0xd7   :  { %v336_v31 = vmul.f32 %v510_v14, %v510_v14  ;;  %v344_v1 = vmul.f32 %v518_v15, %v518_v15 }
  0xd8   :  { %v170_v16 = vpop.f32.mrf.mxu0  ;;  %v202_v17 = vpop.f32.mrf.mxu1 }
  0xd9   :  { %v334_v22 = vmul.f32 %v170_v16, %v170_v16  ;;  %v342_v59 = vmul.f32 %v202_v17, %v202_v17 }
  0xda   :  { %v511_v18 = vpop.f32.mrf.mxu0  ;;  %v519_v19 = vpop.f32.mrf.mxu1 }
  0xdb   :  { %v446_v20 = vpack.c.bf16 %v511_v18, %v510_v14  ;;  %v466_v21 = vpack.c.bf16 %v519_v19, %v518_v15  ;;  %v337_v36 = vmul.f32 %v511_v18, %v511_v18  ;;  %v345_v4 = vmul.f32 %v519_v19, %v519_v19 }
  0xdc   :  { %v173_v23 = vpop.f32.mrf.mxu0  ;;  %v205_v24 = vpop.f32.mrf.mxu1 }
  0xdd   :  { %478 = vst [vmem:[%s653_s2 + $0x8] sm:$0xff] %v446_v20   ;;  %v441_v25 = vpack.c.bf16 %v173_v23, %v170_v16  ;;  %v313_v26 = vadd.f32 %v173_v23, %v170_v16  ;;  %v335_v27 = vmul.f32 %v173_v23, %v173_v23  ;;  %482 = vst [vmem:[%s653_s2 + $0x28] sm:$0xff] %v466_v21  }
  0xde   :  { %v461_v28 = vpack.c.bf16 %v205_v24, %v202_v17  ;;  %v514_v29 = vpop.f32.mrf.mxu0  ;;  %v522_v30 = vpop.f32.mrf.mxu1  ;;  %v343_v63 = vmul.f32 %v205_v24, %v205_v24 }
  0xdf   :  { %442 = vst [vmem:[%s653_s2] sm:$0xff] %v441_v25   ;;  %v314_v32 = vadd.f32 %v510_v14, %v313_v26  ;;  %v350_v33 = vadd.f32 %v335_v27, %v334_v22  ;;  %v340_v53 = vmul.f32 %v514_v29, %v514_v29  ;;  %v348_v13 = vmul.f32 %v522_v30, %v522_v30 }
  0xe0   :  { %481 = vst [vmem:[%s653_s2 + $0x20] sm:$0xff] %v461_v28   ;;  %v186_v34 = vpop.f32.mrf.mxu0  ;;  %v218_v35 = vpop.f32.mrf.mxu1 }
  0xe1   :  { %v351_v37 = vadd.f32 %v350_v33, %v336_v31  ;;  %v315_v38 = vadd.f32 %v511_v18, %v314_v32  ;;  %v338_v42 = vmul.f32 %v186_v34, %v186_v34  ;;  %v346_v8 = vmul.f32 %v218_v35, %v218_v35 }
  0xe2   :  { %v515_v39 = vpop.f32.mrf.mxu0  ;;  %v523_v40 = vpop.f32.mrf.mxu1 }
  0xe3   :  { %v316_v41 = vadd.f32 %v315_v38, %v186_v34  ;;  %v352_v43 = vadd.f32 %v351_v37, %v337_v36  ;;  %v456_v44 = vpack.c.bf16 %v515_v39, %v514_v29  ;;  %v476_v46 = vpack.c.bf16 %v523_v40, %v522_v30 }
  0xe4   :  { %v189_v45 = vpop.f32.mrf.mxu0  ;;  %v221_v47 = vpop.f32.mrf.mxu1  ;;  %v341_v56 = vmul.f32 %v515_v39, %v515_v39  ;;  %v349_v18 = vmul.f32 %v523_v40, %v523_v40 }
  0xe5   :  { %v353_v48 = vadd.f32 %v352_v43, %v338_v42  ;;  %480 = vst [vmem:[%s653_s2 + $0x18] sm:$0xff] %v456_v44   ;;  %v451_v49 = vpack.c.bf16 %v189_v45, %v186_v34  ;;  %v317_v50 = vadd.f32 %v316_v41, %v189_v45  ;;  %v339_v51 = vmul.f32 %v189_v45, %v189_v45 }
  0xe6   :  { %484 = vst [vmem:[%s653_s2 + $0x38] sm:$0xff] %v476_v46   ;;  %v471_v52 = vpack.c.bf16 %v221_v47, %v218_v35  ;;  %v347_v12 = vmul.f32 %v221_v47, %v221_v47 }
  0xe7   :  { %479 = vst [vmem:[%s653_s2 + $0x10] sm:$0xff] %v451_v49   ;;  %v318_v54 = vadd.f32 %v514_v29, %v317_v50  ;;  %v354_v55 = vadd.f32 %v353_v48, %v339_v51 }
  0xe8   :  { %483 = vst [vmem:[%s653_s2 + $0x30] sm:$0xff] %v471_v52  }
  0xe9   :  { %v319_v57 = vadd.f32 %v515_v39, %v318_v54  ;;  %v355_v58 = vadd.f32 %v354_v55, %v340_v53 }
  0xeb   :  { %v356_v60 = vadd.f32 %v355_v58, %v341_v56  ;;  %v320_v61 = vadd.f32 %v319_v57, %v202_v17 }
  0xed   :  { %v321_v62 = vadd.f32 %v320_v61, %v205_v24  ;;  %v357_v0 = vadd.f32 %v356_v60, %v342_v59 }
  0xef   :  { %v322_v2 = vadd.f32 %v518_v15, %v321_v62  ;;  %v358_v3 = vadd.f32 %v357_v0, %v343_v63 }
  0xf1   :  { %v359_v5 = vadd.f32 %v358_v3, %v344_v1  ;;  %v323_v6 = vadd.f32 %v519_v19, %v322_v2 }
  0xf3   :  { %v324_v7 = vadd.f32 %v323_v6, %v218_v35  ;;  %v360_v9 = vadd.f32 %v359_v5, %v345_v4 }
  0xf5   :  { %v361_v10 = vadd.f32 %v360_v9, %v346_v8  ;;  %v325_v11 = vadd.f32 %v324_v7, %v221_v47 }
  0xf7   :  { %v326_v14 = vadd.f32 %v522_v30, %v325_v11  ;;  %v362_v16 = vadd.f32 %v361_v10, %v347_v12 }
  0xf9   :  { %v327_v17 = vadd.f32 %v523_v40, %v326_v14  ;;  %v363_v20 = vadd.f32 %v362_v16, %v348_v13 }
  0xfb   :  { %v328_v21 = vrot.slane %v327_v17, 4  ;;  %v364_v22 = vadd.f32 %v363_v20, %v349_v18 }
  0xfd   :  { %v329_v23 = vadd.f32 %v328_v21, %v327_v17  ;;  %v365_v15 = vrot.slane %v364_v22, 4 }
  0xff   :  { %v330_v24 = vrot.slane %v329_v23, 2  ;;  %v366_v25 = vadd.f32 %v365_v15, %v364_v22 }
 0x101   :  { %v331_v26 = vadd.f32 %v330_v24, %v329_v23  ;;  %v367_v19 = vrot.slane %v366_v25, 2 }
 0x103   :  { %v332_v27 = vrot.slane %v331_v26, 1  ;;  %v368_v28 = vadd.f32 %v367_v19, %v366_v25 }
 0x105   :  { %v333_v29 = vadd.f32 %v332_v27, %v331_v26  ;;  %v369_v31 = vrot.slane %v368_v28, 1 }
 0x107   :  { %v370_v32 = vadd.f32 %v369_v31, %v368_v28  ;;  %371 = vst [vmem:[%s654_s3] sm:$0xff] %v333_v29 }
 0x109   :  { %372 = vst [vmem:[%s655_s4] sm:$0xff] %v370_v32 }

</bundles_post_ra>
